<compile_context>
chip_gen: v6e
topology: v6e:2x2x1
jax: 0.10.0
libtpu: 0.0.40
codegen_flags: <defaults>
</compile_context>

<pallas_src>
import jax
import jax.numpy as jnp
from jax.experimental import pallas as pl
from jax.experimental.pallas import tpu as pltpu

LANE = 128
SUBLANE = 8
TM = 128   # node-row tile


def _ceil_to(x, m):
    return ((x + m - 1) // m) * m


def _pad_2d(x, rows, cols):
    return jnp.pad(x, ((0, rows - x.shape[0]), (0, cols - x.shape[1])))


def _pick_tk(n_pad):
    # 256-deep contraction tile when possible (matches v6e/v7x MXU, halves grid steps).
    return 256 if n_pad % 256 == 0 else 128


# ----------------------------------------------------------------------------
# Kernel 1: fused GIN layer, tiled over (node rows, node contraction)
#   acc += A[i,k] @ x[k]                       (bf16 MXU, f32 accumulate)
#   on last k:  h  = (1+eps)*x[i] + acc
#               out = relu( relu(h @ W1 + b1) @ W2 + b2 )   (bf16 MXU, f32 acc)
#   two outputs: f32 (returned z slab) and bf16 (feeds next layer / pool).
# ----------------------------------------------------------------------------
def _gin_layer_kernel(eps_ref, a_ref, xk_ref, xi_ref,
                      w1_ref, b1_ref, w2_ref, b2_ref,
                      out_f32_ref, out_bf16_ref, acc_ref):
    k = pl.program_id(1)

    @pl.when(k == 0)
    def _():
        acc_ref[...] = jnp.zeros_like(acc_ref)

    acc_ref[...] += jnp.dot(a_ref[...], xk_ref[...],
                            preferred_element_type=jnp.float32)

    @pl.when(k == pl.num_programs(1) - 1)
    def _():
        eps = eps_ref[0]                                       # SMEM scalar
        h = (1.0 + eps) * xi_ref[...].astype(jnp.float32) + acc_ref[...]
        h1 = jnp.dot(h.astype(jnp.bfloat16), w1_ref[...],
                     preferred_element_type=jnp.float32) + b1_ref[...]
        h1 = jnp.maximum(h1, 0.0)
        h2 = jnp.dot(h1.astype(jnp.bfloat16), w2_ref[...],
                     preferred_element_type=jnp.float32) + b2_ref[...]
        h2 = jnp.maximum(h2, 0.0)
        out_f32_ref[...] = h2
        out_bf16_ref[...] = h2.astype(jnp.bfloat16)            # free VPU filler cast


def gin_layer(a_bf16, x_bf16, w1, b1, w2, b2, eps, *, tm=TM):
    n_pad = a_bf16.shape[0]
    f_pad = x_bf16.shape[1]
    h_pad = w2.shape[1]
    tk = _pick_tk(n_pad)
    grid = (n_pad // tm, n_pad // tk)
    return pl.pallas_call(
        _gin_layer_kernel,
        out_shape=(jax.ShapeDtypeStruct((n_pad, h_pad), jnp.float32),
                   jax.ShapeDtypeStruct((n_pad, h_pad), jnp.bfloat16)),
        grid=grid,
        in_specs=[
            pl.BlockSpec(memory_space=pltpu.MemorySpace.SMEM),        # eps (1,) scalar
            pl.BlockSpec((tm, tk), lambda i, k: (i, k)),              # A tile (bf16)
            pl.BlockSpec((tk, f_pad), lambda i, k: (k, 0)),           # x contraction tile (bf16)
            pl.BlockSpec((tm, f_pad), lambda i, k: (i, 0)),           # x self-term tile (bf16)
            pl.BlockSpec((f_pad, h_pad), lambda i, k: (0, 0)),        # W1 (bf16, resident)
            pl.BlockSpec((1, h_pad), lambda i, k: (0, 0)),            # b1 (f32)
            pl.BlockSpec((h_pad, h_pad), lambda i, k: (0, 0)),        # W2 (bf16, resident)
            pl.BlockSpec((1, h_pad), lambda i, k: (0, 0)),            # b2 (f32)
        ],
        out_specs=(pl.BlockSpec((tm, h_pad), lambda i, k: (i, 0)),
                   pl.BlockSpec((tm, h_pad), lambda i, k: (i, 0))),
        scratch_shapes=[pltpu.VMEM((tm, f_pad), jnp.float32)],
        compiler_params=pltpu.CompilerParams(
            dimension_semantics=("parallel", "arbitrary"),
            vmem_limit_bytes=32 * 1024 * 1024,
        ),
    )(eps, a_bf16, x_bf16, x_bf16, w1, b1, w2, b2)


# ----------------------------------------------------------------------------
# Kernel 2: global add pool  g = B @ z, tiled (parallel columns, arbitrary K)
#   B and z are bf16 (B is 0/1 -> exact), f32 accumulate.
# ----------------------------------------------------------------------------
def _pool_kernel(b_ref, z_ref, g_ref, acc_ref):
    k = pl.program_id(1)

    @pl.when(k == 0)
    def _():
        acc_ref[...] = jnp.zeros_like(acc_ref)

    acc_ref[...] += jnp.dot(b_ref[...], z_ref[...],
                            preferred_element_type=jnp.float32)

    @pl.when(k == pl.num_programs(1) - 1)
    def _():
        g_ref[...] = acc_ref[...].astype(g_ref.dtype)


def global_add_pool(b_mat, z, *, tn=LANE):
    g_rows, n_pad = b_mat.shape
    d_pad = z.shape[1]
    tk = 512 if n_pad % 512 == 0 else _pick_tk(n_pad)
    tn = min(tn, d_pad)
    grid = (d_pad // tn, n_pad // tk)
    return pl.pallas_call(
        _pool_kernel,
        out_shape=jax.ShapeDtypeStruct((g_rows, d_pad), jnp.float32),
        grid=grid,
        in_specs=[
            pl.BlockSpec((g_rows, tk), lambda j, k: (0, k)),          # B tile (bf16)
            pl.BlockSpec((tk, tn), lambda j, k: (k, j)),              # z tile (bf16)
        ],
        out_specs=pl.BlockSpec((g_rows, tn), lambda j, k: (0, j)),
        scratch_shapes=[pltpu.VMEM((g_rows, tn), jnp.float32)],
        compiler_params=pltpu.CompilerParams(
            dimension_semantics=("parallel", "arbitrary"),
            vmem_limit_bytes=32 * 1024 * 1024,
        ),
    )(b_mat, z)


# ----------------------------------------------------------------------------
# Kernel 3: linear projection head  y = x @ W + b  (row-tiled, resident bf16 W)
# ----------------------------------------------------------------------------
def _linear_kernel(x_ref, w_ref, b_ref, o_ref):
    o_ref[...] = (jnp.dot(x_ref[...].astype(jnp.bfloat16), w_ref[...],
                          preferred_element_type=jnp.float32)
                  + b_ref[...]).astype(o_ref.dtype)


def linear(x, w, b, *, tm=TM):
    m_pad, k_pad = x.shape
    p_pad = w.shape[1]
    tm = min(tm, m_pad)
    return pl.pallas_call(
        _linear_kernel,
        out_shape=jax.ShapeDtypeStruct((m_pad, p_pad), jnp.float32),
        grid=(m_pad // tm,),
        in_specs=[
            pl.BlockSpec((tm, k_pad), lambda i: (i, 0)),
            pl.BlockSpec((k_pad, p_pad), lambda i: (0, 0)),           # bf16 resident W
            pl.BlockSpec((1, p_pad), lambda i: (0, 0)),
        ],
        out_specs=pl.BlockSpec((tm, p_pad), lambda i: (i, 0)),
        compiler_params=pltpu.CompilerParams(
            dimension_semantics=("parallel",),
            vmem_limit_bytes=32 * 1024 * 1024,
        ),
    )(x, w, b)


# ----------------------------------------------------------------------------
# Encoder wrapper (mirrors the PyTorch module structure)
# ----------------------------------------------------------------------------
class Encoder:
    def __init__(self, key, in_dim, hidden_dim, num_layers=2, proj_dim=32):
        self.in_dim = in_dim
        self.hidden_dim = hidden_dim
        self.num_layers = num_layers
        self.proj_dim = proj_dim

        self.f_pad = _ceil_to(in_dim, LANE)
        self.h_pad = _ceil_to(hidden_dim, LANE)
        self.p_pad = _ceil_to(proj_dim, LANE)
        emb_dim = num_layers * hidden_dim
        self.emb_dim = emb_dim
        self.emb_in_pad = _ceil_to(emb_dim, LANE)   # padded contraction dim of projection heads

        keys = jax.random.split(key, 2 * num_layers + 2)
        k = iter(keys)

        def init_w(shape):
            fan_in = shape[0]
            return (jax.random.normal(next(k), shape, jnp.float32)
                    * (1.0 / jnp.sqrt(jnp.float32(fan_in))))

        # GIN encoder parameters, stored lane-padded. Weights in bf16 (MXU path),
        # biases in f32 (added after f32 accumulation). Padding is zeros (inert).
        self.layers = []
        d_in, d_in_pad = in_dim, self.f_pad
        for _ in range(num_layers):
            w1 = _pad_2d(init_w((d_in, hidden_dim)), d_in_pad, self.h_pad).astype(jnp.bfloat16)
            b1 = jnp.zeros((1, self.h_pad), jnp.float32)
            w2 = _pad_2d(init_w((hidden_dim, hidden_dim)), self.h_pad, self.h_pad).astype(jnp.bfloat16)
            b2 = jnp.zeros((1, self.h_pad), jnp.float32)
            eps = jnp.zeros((1,), jnp.float32)
            self.layers.append((w1, b1, w2, b2, eps))
            d_in, d_in_pad = hidden_dim, self.h_pad

        # projection heads (local_fc / global_fc), lane-padded, bf16 weights
        self.local_w = _pad_2d(init_w((emb_dim, proj_dim)),
                               self.emb_in_pad, self.p_pad).astype(jnp.bfloat16)
        self.local_b = jnp.zeros((1, self.p_pad), jnp.float32)
        self.global_w = _pad_2d(init_w((emb_dim, proj_dim)),
                                self.emb_in_pad, self.p_pad).astype(jnp.bfloat16)
        self.global_b = jnp.zeros((1, self.p_pad), jnp.float32)

    def forward(self, x, edge_index, batch, num_graphs):
        n = x.shape[0]
        n_pad = _ceil_to(n, TM)
        g_rows = _ceil_to(num_graphs, 16)   # 16-row alignment for bf16 sublane packing

        # glue: edge list -> dense bf16 adjacency (0/1 small counts are exact;
        # no f32 intermediate -> no extra n_pad^2 HBM round trip)
        src, dst = edge_index[0], edge_index[1]
        a_bf16 = (jnp.zeros((n_pad, n_pad), jnp.bfloat16)
                  .at[dst, src].add(jnp.ones(dst.shape, jnp.bfloat16)))

        # glue: graph ids -> one-hot pooling matrix (padded nodes map to no graph)
        batch_pad = jnp.full((n_pad,), -1, jnp.int32).at[:n].set(batch.astype(jnp.int32))
        b_mat = (batch_pad[None, :] ==
                 jnp.arange(g_rows, dtype=jnp.int32)[:, None]).astype(jnp.bfloat16)

        h_bf = _pad_2d(x.astype(jnp.float32), n_pad, self.f_pad).astype(jnp.bfloat16)
        zs_f32 = []
        gs_pad = []
        for (w1, b1, w2, b2, eps) in self.layers:
            h_f32, h_bf = gin_layer(a_bf16, h_bf, w1, b1, w2, b2, eps)
            zs_f32.append(h_f32)
            # per-layer pooling (linear -> exact); avoids materializing a z_pad concat
            gs_pad.append(global_add_pool(b_mat, h_bf))

        H = self.hidden_dim
        z = jnp.concatenate([zf[:n, :H] for zf in zs_f32], axis=1)
        g = jnp.concatenate([gp[:num_graphs, :H] for gp in gs_pad], axis=1)
        return z, g

    def _proj(self, x, w, b):
        m = x.shape[0]
        m_pad = _ceil_to(m, LANE) if m >= LANE else _ceil_to(m, SUBLANE)
        x_pad = _pad_2d(x.astype(jnp.float32), m_pad, w.shape[0])
        y = linear(x_pad, w, b)
        return y[:m, :self.proj_dim]

    def project(self, z, g):
        return (self._proj(z, self.local_w, self.local_b),
                self._proj(g, self.global_w, self.global_b))


# ----------------------------------------------------------------------------
# pure-JAX reference (un-padded, f32) for correctness checking
# ----------------------------------------------------------------------------
def reference_forward(enc, x, edge_index, batch, num_graphs):
    n = x.shape[0]
    src, dst = edge_index[0], edge_index[1]
    a = jnp.zeros((n, n), jnp.float32).at[dst, src].add(1.0)
    h = x.astype(jnp.float32)
    zs = []
    for li, (w1, b1, w2, b2, eps) in enumerate(enc.layers):
        d_in = enc.in_dim if li == 0 else enc.hidden_dim
        w1u = w1[:d_in, :enc.hidden_dim].astype(jnp.float32)
        b1u = b1[:, :enc.hidden_dim]
        w2u = w2[:enc.hidden_dim, :enc.hidden_dim].astype(jnp.float32)
        b2u = b2[:, :enc.hidden_dim]
        hh = (1.0 + eps[0]) * h + a @ h
        h1 = jnp.maximum(hh @ w1u + b1u, 0.0)
        h = jnp.maximum(h1 @ w2u + b2u, 0.0)
        zs.append(h)
    z = jnp.concatenate(zs, axis=1)
    b_mat = (batch[None, :] == jnp.arange(num_graphs)[:, None]).astype(jnp.float32)
    g = b_mat @ z
    return z, g


if __name__ == "__main__":
    key = jax.random.PRNGKey(0)
    k_feat, k_params = jax.random.split(key)

    # small synthetic batch: 2 graphs x 8 nodes, 8 input features
    N, F, H, G, P = 16, 8, 32, 2, 32
    x = jax.random.normal(k_feat, (N, F), jnp.float32)

    # deterministic edges: a directed ring in each graph (both directions)
    idx0 = jnp.arange(8)
    ring_src = jnp.concatenate([idx0, (idx0 + 1) % 8])
    ring_dst = jnp.concatenate([(idx0 + 1) % 8, idx0])
    src = jnp.concatenate([ring_src, ring_src + 8])
    dst = jnp.concatenate([ring_dst, ring_dst + 8])
    edge_index = jnp.stack([src, dst]).astype(jnp.int32)          # [2, E]

    batch = jnp.concatenate([jnp.zeros(8, jnp.int32), jnp.ones(8, jnp.int32)])

    enc = Encoder(k_params, in_dim=F, hidden_dim=H, num_layers=2, proj_dim=P)

    z, g = enc.forward(x, edge_index, batch, num_graphs=G)
    zp, gp = enc.project(z, g)
    jax.block_until_ready((z, g, zp, gp))

    assert z.shape == (N, 2 * H) and g.shape == (G, 2 * H)
    assert zp.shape == (N, P) and gp.shape == (G, P)

    # correctness vs. f32 reference (loose tolerance: A/x/W go through bf16 on the MXU)
    z_ref, g_ref = reference_forward(enc, x, edge_index, batch, G)
    assert jnp.allclose(z, z_ref, rtol=1e-1, atol=1e-1), "z mismatch"
    assert jnp.allclose(g, g_ref, rtol=1e-1, atol=1e-1), "g mismatch"

    # projection reference emulates the kernel's bf16-input / bf16-weight dot
    emb = 2 * H
    zp_ref = (jnp.dot(z.astype(jnp.bfloat16), enc.local_w[:emb, :P],
                      preferred_element_type=jnp.float32) + enc.local_b[:, :P])
    gp_ref = (jnp.dot(g.astype(jnp.bfloat16), enc.global_w[:emb, :P],
                      preferred_element_type=jnp.float32) + enc.global_b[:, :P])
    assert jnp.allclose(zp, zp_ref, rtol=2e-2, atol=2e-2), "local projection mismatch"
    assert jnp.allclose(gp, gp_ref, rtol=2e-2, atol=2e-2), "global projection mismatch"

    print("KERNEL_OK")
</pallas_src>

<mosaic_0001>
module attributes {stable_mosaic.version = 11 : i64} {
  func.func @_gin_layer_kernel(%arg0: i32, %arg1: i32, %arg2: memref<1xf32, #tpu.memory_space<smem>>, %arg3: memref<128x128xbf16, #tpu.memory_space<vmem>>, %arg4: memref<128x128xbf16, #tpu.memory_space<vmem>>, %arg5: memref<128x128xbf16, #tpu.memory_space<vmem>>, %arg6: memref<128x128xbf16, #tpu.memory_space<vmem>>, %arg7: memref<1x128xf32, #tpu.memory_space<vmem>>, %arg8: memref<128x128xbf16, #tpu.memory_space<vmem>>, %arg9: memref<1x128xf32, #tpu.memory_space<vmem>>, %arg10: memref<128x128xf32, #tpu.memory_space<vmem>>, %arg11: memref<128x128xbf16, #tpu.memory_space<vmem>>, %arg12: memref<128x128xf32, #tpu.memory_space<vmem>>) attributes {dimension_semantics = [#tpu.dimension_semantics<parallel>, #tpu.dimension_semantics<arbitrary>], iteration_bounds = array<i64: 1, 1>, scalar_prefetch = 0 : i64, scratch_operands = 1 : i64, tpu.core_type = #tpu.core_type<tc>, window_params = [{transform_indices = @transform_0, window_bounds = array<i64: 1>}, {transform_indices = @transform_1, window_bounds = array<i64: 128, 128>}, {transform_indices = @transform_2, window_bounds = array<i64: 128, 128>}, {transform_indices = @transform_3, window_bounds = array<i64: 128, 128>}, {pipeline_mode = #tpu.pipeline_mode<synchronous>, transform_indices = @transform_4, window_bounds = array<i64: 128, 128>}, {pipeline_mode = #tpu.pipeline_mode<synchronous>, transform_indices = @transform_5, window_bounds = array<i64: 1, 128>}, {pipeline_mode = #tpu.pipeline_mode<synchronous>, transform_indices = @transform_6, window_bounds = array<i64: 128, 128>}, {pipeline_mode = #tpu.pipeline_mode<synchronous>, transform_indices = @transform_7, window_bounds = array<i64: 1, 128>}, {transform_indices = @transform_8, window_bounds = array<i64: 128, 128>}, {transform_indices = @transform_9, window_bounds = array<i64: 128, 128>}]} {
    %c0_i32 = arith.constant 0 : i32
    %0 = arith.cmpi eq, %arg1, %c0_i32 : i32
    %1 = arith.extui %0 : i1 to i32
    %c0_i32_0 = arith.constant 0 : i32
    %2 = arith.cmpi ne, %1, %c0_i32_0 : i32
    scf.if %2 {
      %cst_10 = arith.constant 0.000000e+00 : f32
      %12 = vector.broadcast %cst_10 : f32 to vector<128x128xf32>
      %c0_11 = arith.constant 0 : index
      %c0_12 = arith.constant 0 : index
      %13 = vector.load %arg12[%c0_11, %c0_12] : memref<128x128xf32, #tpu.memory_space<vmem>>, vector<128x128xf32>
      tpu.vector_store %arg12[%c0_11, %c0_12], %12 {strides = array<i32>} : memref<128x128xf32, #tpu.memory_space<vmem>>, vector<128x128xf32>,
    } else {
    }
    %c0 = arith.constant 0 : index
    %c0_1 = arith.constant 0 : index
    %3 = vector.load %arg12[%c0, %c0_1] : memref<128x128xf32, #tpu.memory_space<vmem>>, vector<128x128xf32>
    %c0_2 = arith.constant 0 : index
    %c0_3 = arith.constant 0 : index
    %4 = vector.load %arg3[%c0_2, %c0_3] : memref<128x128xbf16, #tpu.memory_space<vmem>>, vector<128x128xbf16>
    %c0_4 = arith.constant 0 : index
    %c0_5 = arith.constant 0 : index
    %5 = vector.load %arg4[%c0_4, %c0_5] : memref<128x128xbf16, #tpu.memory_space<vmem>>, vector<128x128xbf16>
    %cst = arith.constant dense<0.000000e+00> : vector<128x128xf32>
    %6 = tpu.matmul %4, %5, %cst {dimension_numbers = #tpu.dot_dimension_numbers<[1], [0], [0], [1], [0, 0, 1, 1], [], []>} : vector<128x128xbf16>, vector<128x128xbf16>, vector<128x128xf32> -> vector<128x128xf32>
    %7 = arith.addf %3, %6 : vector<128x128xf32>
    %c0_6 = arith.constant 0 : index
    %c0_7 = arith.constant 0 : index
    %8 = vector.load %arg12[%c0_6, %c0_7] : memref<128x128xf32, #tpu.memory_space<vmem>>, vector<128x128xf32>
    tpu.vector_store %arg12[%c0_6, %c0_7], %7 {strides = array<i32>} : memref<128x128xf32, #tpu.memory_space<vmem>>, vector<128x128xf32>,
    %c0_i32_8 = arith.constant 0 : i32
    %9 = arith.cmpi eq, %arg1, %c0_i32_8 : i32
    %10 = arith.extui %9 : i1 to i32
    %c0_i32_9 = arith.constant 0 : i32
    %11 = arith.cmpi ne, %10, %c0_i32_9 : i32
    scf.if %11 {
      %c0_10 = arith.constant 0 : index
      %12 = memref.load %arg2[%c0_10] : memref<1xf32, #tpu.memory_space<smem>>
      %cst_11 = arith.constant 1.000000e+00 : f32
      %13 = arith.addf %cst_11, %12 : f32
      %c0_12 = arith.constant 0 : index
      %c0_13 = arith.constant 0 : index
      %14 = vector.load %arg5[%c0_12, %c0_13] : memref<128x128xbf16, #tpu.memory_space<vmem>>, vector<128x128xbf16>
      %15 = arith.extf %14 : vector<128x128xbf16> to vector<128x128xf32>
      %16 = vector.broadcast %13 : f32 to vector<128x128xf32>
      %17 = arith.mulf %16, %15 : vector<128x128xf32>
      %c0_14 = arith.constant 0 : index
      %c0_15 = arith.constant 0 : index
      %18 = vector.load %arg12[%c0_14, %c0_15] : memref<128x128xf32, #tpu.memory_space<vmem>>, vector<128x128xf32>
      %19 = arith.addf %17, %18 : vector<128x128xf32>
      %20 = arith.truncf %19 : vector<128x128xf32> to vector<128x128xbf16>
      %c0_16 = arith.constant 0 : index
      %c0_17 = arith.constant 0 : index
      %21 = vector.load %arg6[%c0_16, %c0_17] : memref<128x128xbf16, #tpu.memory_space<vmem>>, vector<128x128xbf16>
      %cst_18 = arith.constant dense<0.000000e+00> : vector<128x128xf32>
      %22 = tpu.matmul %20, %21, %cst_18 {dimension_numbers = #tpu.dot_dimension_numbers<[1], [0], [0], [1], [0, 0, 1, 1], [], []>} : vector<128x128xbf16>, vector<128x128xbf16>, vector<128x128xf32> -> vector<128x128xf32>
      %c0_19 = arith.constant 0 : index
      %c0_20 = arith.constant 0 : index
      %23 = vector.load %arg7[%c0_19, %c0_20] : memref<1x128xf32, #tpu.memory_space<vmem>>, vector<1x128xf32>
      %24 = vector.broadcast %23 : vector<1x128xf32> to vector<128x128xf32>
      %25 = arith.addf %22, %24 : vector<128x128xf32>
      %cst_21 = arith.constant 0.000000e+00 : f32
      %26 = vector.broadcast %cst_21 : f32 to vector<128x128xf32>
      %27 = arith.maximumf %25, %26 : vector<128x128xf32>
      %28 = arith.truncf %27 : vector<128x128xf32> to vector<128x128xbf16>
      %c0_22 = arith.constant 0 : index
      %c0_23 = arith.constant 0 : index
      %29 = vector.load %arg8[%c0_22, %c0_23] : memref<128x128xbf16, #tpu.memory_space<vmem>>, vector<128x128xbf16>
      %cst_24 = arith.constant dense<0.000000e+00> : vector<128x128xf32>
      %30 = tpu.matmul %28, %29, %cst_24 {dimension_numbers = #tpu.dot_dimension_numbers<[1], [0], [0], [1], [0, 0, 1, 1], [], []>} : vector<128x128xbf16>, vector<128x128xbf16>, vector<128x128xf32> -> vector<128x128xf32>
      %c0_25 = arith.constant 0 : index
      %c0_26 = arith.constant 0 : index
      %31 = vector.load %arg9[%c0_25, %c0_26] : memref<1x128xf32, #tpu.memory_space<vmem>>, vector<1x128xf32>
      %32 = vector.broadcast %31 : vector<1x128xf32> to vector<128x128xf32>
      %33 = arith.addf %30, %32 : vector<128x128xf32>
      %cst_27 = arith.constant 0.000000e+00 : f32
      %34 = vector.broadcast %cst_27 : f32 to vector<128x128xf32>
      %35 = arith.maximumf %33, %34 : vector<128x128xf32>
      %c0_28 = arith.constant 0 : index
      %c0_29 = arith.constant 0 : index
      %36 = vector.load %arg10[%c0_28, %c0_29] : memref<128x128xf32, #tpu.memory_space<vmem>>, vector<128x128xf32>
      tpu.vector_store %arg10[%c0_28, %c0_29], %35 {strides = array<i32>} : memref<128x128xf32, #tpu.memory_space<vmem>>, vector<128x128xf32>,
      %37 = arith.truncf %35 : vector<128x128xf32> to vector<128x128xbf16>
      %c0_30 = arith.constant 0 : index
      %c0_31 = arith.constant 0 : index
      %38 = vector.load %arg11[%c0_30, %c0_31] : memref<128x128xbf16, #tpu.memory_space<vmem>>, vector<128x128xbf16>
      tpu.vector_store %arg11[%c0_30, %c0_31], %37 {strides = array<i32>} : memref<128x128xbf16, #tpu.memory_space<vmem>>, vector<128x128xbf16>,
    } else {
    }
    return
  }
  func.func @transform_0(%arg0: i32, %arg1: i32) -> i32 {
    %c0_i32 = arith.constant 0 : i32
    %c0_i32_0 = arith.constant 0 : i32
    return %c0_i32 : i32
  }
  func.func @transform_1(%arg0: i32, %arg1: i32) -> (i32, i32) {
    %c0_i32 = arith.constant 0 : i32
    return %arg0, %arg1 : i32, i32
  }
  func.func @transform_2(%arg0: i32, %arg1: i32) -> (i32, i32) {
    %c0_i32 = arith.constant 0 : i32
    %c0_i32_0 = arith.constant 0 : i32
    return %arg1, %c0_i32 : i32, i32
  }
  func.func @transform_3(%arg0: i32, %arg1: i32) -> (i32, i32) {
    %c0_i32 = arith.constant 0 : i32
    %c0_i32_0 = arith.constant 0 : i32
    return %arg0, %c0_i32 : i32, i32
  }
  func.func @transform_4(%arg0: i32, %arg1: i32) -> (i32, i32) {
    %c0_i32 = arith.constant 0 : i32
    %c0_i32_0 = arith.constant 0 : i32
    %c0_i32_1 = arith.constant 0 : i32
    return %c0_i32, %c0_i32_0 : i32, i32
  }
  func.func @transform_5(%arg0: i32, %arg1: i32) -> (i32, i32) {
    %c0_i32 = arith.constant 0 : i32
    %c0_i32_0 = arith.constant 0 : i32
    %c0_i32_1 = arith.constant 0 : i32
    return %c0_i32, %c0_i32_0 : i32, i32
  }
  func.func @transform_6(%arg0: i32, %arg1: i32) -> (i32, i32) {
    %c0_i32 = arith.constant 0 : i32
    %c0_i32_0 = arith.constant 0 : i32
    %c0_i32_1 = arith.constant 0 : i32
    return %c0_i32, %c0_i32_0 : i32, i32
  }
  func.func @transform_7(%arg0: i32, %arg1: i32) -> (i32, i32) {
    %c0_i32 = arith.constant 0 : i32
    %c0_i32_0 = arith.constant 0 : i32
    %c0_i32_1 = arith.constant 0 : i32
    return %c0_i32, %c0_i32_0 : i32, i32
  }
  func.func @transform_8(%arg0: i32, %arg1: i32) -> (i32, i32) {
    %c0_i32 = arith.constant 0 : i32
    %c0_i32_0 = arith.constant 0 : i32
    return %arg0, %c0_i32 : i32, i32
  }
  func.func @transform_9(%arg0: i32, %arg1: i32) -> (i32, i32) {
    %c0_i32 = arith.constant 0 : i32
    %c0_i32_0 = arith.constant 0 : i32
    return %arg0, %c0_i32 : i32, i32
  }
}

</mosaic_0001>

<bundles_post_ra>
// kernel: tpu_custom_call.1
= control target key start
LH: loop header
LB: loop body
LE: loop exit
PB: predicated region body
PF: predicated region fallthrough
CT: control target
= control target key end

     0   :  { %16 = vsyncpa [#allocation5], 0  ;;  %s1671_s0 = inlined_call_operand.<no memory space> [shape: f32[1], index: 0, kind: input, shape index: {}]   ;;  %s1672_s1 = inlined_call_operand.hbm [shape: bf16[128,128], index: 1, kind: input, shape index: {}]   ;;  %s1673_s2 = inlined_call_operand.hbm [shape: bf16[128,128], index: 2, kind: input, shape index: {}]   ;;  %s1674_s3 = inlined_call_operand.hbm [shape: bf16[128,128], index: 3, kind: input, shape index: {}]   ;;  %s1675_s4 = inlined_call_operand.hbm [shape: bf16[128,128], index: 4, kind: input, shape index: {}]   ;;  %s1676_s5 = inlined_call_operand.vmem [shape: f32[1,128], index: 5, kind: input, shape index: {}]   ;;  %s1677_s6 = inlined_call_operand.hbm [shape: bf16[128,128], index: 6, kind: input, shape index: {}]   ;;  %s1678_s7 = inlined_call_operand.vmem [shape: f32[1,128], index: 7, kind: input, shape index: {}]   ;;  %s1679_s8 = inlined_call_operand.hbm [shape: f32[128,128], index: 8, kind: output, shape index: {0}]   ;;  %s1680_s9 = inlined_call_operand.hbm [shape: bf16[128,128], index: 9, kind: output, shape index: {1}]  }
   0x1   :  { %17 = vsyncpa [#allocation8], 0 }
   0x2   :  { %18 = vsyncpa [#allocation11], 0 }
   0x3   :  { %19 = vsyncpa [#allocation6], 0 }
   0x4   :  { %20 = vsyncpa [#allocation15], 0  ;;  %s1502_s30 = smov [#allocation7]   ;;  %s1503_s11 = smov [#allocation10]  }
   0x5   :  { %s40_s10 = sshll.u32 %s1502_s30, 4  ;;  %s64_s12 = sshll.u32 %s1503_s11, 4  ;;  %s41_s10 = int_to_ptr.vmem [resolvable:$true] %s40_s10  ;;  %s65_s12 = int_to_ptr.vmem [resolvable:$true] %s64_s12 }
   0x6   :  { %s1360_s13 = scalar_lea.vmem %s41_s10, 1024  ;;  %p1365_p1 = scmp.lt.s32.totalorder %s41_s10, %s41_s10 }
   0x7   :  { %p1361_p0 = scmp.ne.s32.totalorder %s41_s10, %s1360_s13  ;;  %p1366_p2 = scmp.lt.s32.totalorder %s1360_s13, %s1360_s13 }
   0x9   :  { %p1367_p3 = por %p1366_p2, %p1365_p1 }
   0xb   :  { %p1368_p4 = pnand %p1367_p3, %p1361_p0 }
   0xd   :  { %1371 = shalt.err (!%p1368_p4)
}
   0xe   :  { %s1504_s14 = smov 64   ;;  %s1505_s15 = smov 4  }
   0xf   :  { %46 = dma.hbm_to_vmem [thread:$0]  %s1673_s2, 1024, %s41_s10, [#allocation8], %s1504_s14, %s1504_s14, %s1505_s15  }
  0x10   :  { %s1380_s18 = scalar_lea.vmem %s65_s12, 1024  ;;  %p1385_p6 = scmp.lt.s32.totalorder %s65_s12, %s65_s12 }
  0x11   :  { %p1381_p5 = scmp.ne.s32.totalorder %s65_s12, %s1380_s18  ;;  %p1386_p7 = scmp.lt.s32.totalorder %s1380_s18, %s1380_s18 }
  0x13   :  { %p1387_p8 = por %p1386_p7, %p1385_p6 }
  0x15   :  { %p1388_p9 = pnand %p1387_p8, %p1381_p5 }
  0x17   :  { %1391 = shalt.err (!%p1388_p9)
}
  0x18   :  { %70 = dma.hbm_to_vmem [thread:$0]  %s1675_s4, 1024, %s65_s12, [#allocation11], %s1504_s14, %s1504_s14, %s1505_s15  }
  0x19   :  { %s1506_s21 = smov [#allocation4]   ;;  %s1507_s23 = smov [#allocation9]  }
  0x1a   :  { %s28_s22 = sshll.u32 %s1506_s21, 4  ;;  %s52_s24 = sshll.u32 %s1507_s23, 4  ;;  %s29_s22 = int_to_ptr.vmem [resolvable:$true] %s28_s22  ;;  %s53_s24 = int_to_ptr.vmem [resolvable:$true] %s52_s24 }
  0x1b   :  { %s1400_s2 = scalar_lea.vmem %s29_s22, 1024  ;;  %p1405_p11 = scmp.lt.s32.totalorder %s29_s22, %s29_s22 }
  0x1c   :  { %p1401_p10 = scmp.ne.s32.totalorder %s29_s22, %s1400_s2  ;;  %p1406_p12 = scmp.lt.s32.totalorder %s1400_s2, %s1400_s2 }
  0x1e   :  { %p1407_p13 = por %p1406_p12, %p1405_p11 }
  0x20   :  { %p1408_p0 = pnand %p1407_p13, %p1401_p10 }
  0x22   :  { %1411 = shalt.err (!%p1408_p0)
}
  0x23   :  { %34 = dma.hbm_to_vmem [thread:$0]  %s1672_s1, 1024, %s29_s22, [#allocation5], %s1504_s14, %s1504_s14, %s1505_s15  }
  0x24   :  { %s1420_s4 = scalar_lea.vmem %s53_s24, 1024  ;;  %p1425_p2 = scmp.lt.s32.totalorder %s53_s24, %s53_s24 }
  0x25   :  { %p1421_p1 = scmp.ne.s32.totalorder %s53_s24, %s1420_s4  ;;  %p1426_p3 = scmp.lt.s32.totalorder %s1420_s4, %s1420_s4 }
  0x27   :  { %p1427_p4 = por %p1426_p3, %p1425_p2 }
  0x29   :  { %p1428_p5 = pnand %p1427_p4, %p1421_p1 }
  0x2b   :  { %1431 = shalt.err (!%p1428_p5)
}
  0x2c   :  { %58 = dma.hbm_to_vmem [thread:$0]  %s1674_s3, 1024, %s53_s24, [#allocation8], %s1504_s14, %s1504_s14, %s1505_s15  }
  0x2d   :  { %s1508_s29 = smov [#allocation12]  }
  0x2e   :  { %s78_s30 = sshll.u32 %s1508_s29, 4  ;;  %s79_s30 = int_to_ptr.vmem [resolvable:$true] %s78_s30 }
  0x2f   :  { %s1440_s10 = scalar_lea.vmem %s79_s30, 1024  ;;  %p1445_p7 = scmp.lt.s32.totalorder %s79_s30, %s79_s30 }
  0x30   :  { %p1441_p6 = scmp.ne.s32.totalorder %s79_s30, %s1440_s10  ;;  %p1446_p8 = scmp.lt.s32.totalorder %s1440_s10, %s1440_s10 }
  0x32   :  { %p1447_p9 = por %p1446_p8, %p1445_p7 }
  0x34   :  { %p1448_p10 = pnand %p1447_p9, %p1441_p6 }
  0x36   :  { %1451 = shalt.err (!%p1448_p10)
}
  0x37   :  { %84 = dma.hbm_to_vmem [thread:$0]  %s1677_s6, 1024, %s79_s30, [#allocation11], %s1504_s14, %s1504_s14, %s1505_s15  }
  0x38   :  { %1492 = dma.done.wait [#allocation5], 1024  }
  0x39   :  { %1493 = vsyncadd [#allocation5], 4294966272 }
  0x3a   :  { %1494 = dma.done.wait [#allocation8], 2048  }
  0x3b   :  { %1495 = vsyncadd [#allocation8], 4294965248 }
  0x3c   :  { %1496 = dma.done.wait [#allocation11], 2048  }
  0x3d   :  { %1497 = vsyncadd [#allocation11], 4294965248  ;;  %v1320_v0 = vld [vmem:[#allocation7 + $0x38] sm:$0xff]   ;;  %v1321_v1 = vld [vmem:[#allocation7 + $0x30] sm:$0xff]   ;;  %s400_s12 = sadd.f32 1.0, %s1671_s0  ;;  %s1510_s18 = smov [#allocation14]  }
  0x3e   :  { %1197 = vmatprep.subr.bf16.mxu0 %v1320_v0  ;;  %v1322_v2 = vld [vmem:[#allocation7 + $0x28] sm:$0xff]   ;;  %v1323_v3 = vld [vmem:[#allocation7 + $0x20] sm:$0xff]   ;;  %v1324_v5 = vld [vmem:[#allocation7 + $0x18] sm:$0xff]   ;;  %s979_s19 = sshll.u32 %s1510_s18, 4  ;;  %s980_s19 = int_to_ptr.vmem [resolvable:$true] %s979_s19 }
  0x3f   :  { %1198 = vmatpush3.bf16.msra.mxu0 %v1320_v0  ;;  %v1328_v4 = vld [vmem:[#allocation4] sm:$0xff]   ;;  %v1325_v6 = vld [vmem:[#allocation7 + $0x10] sm:$0xff]   ;;  %v1336_v7 = vld [vmem:[#allocation10 + $0x38] sm:$0xff]   ;;  %v1612_v36 = vstv %s400_s12 }
  0x40   :  { %1199 = vmatprep.subr.bf16.mxu0 %v1321_v1  ;;  %1213 = vmatprep.mubr.bf16.mxu0 %v1328_v4  ;;  %v1337_v8 = vld [vmem:[#allocation10 + $0x30] sm:$0xff]   ;;  %v1326_v9 = vld [vmem:[#allocation7 + $0x8] sm:$0xff]   ;;  %v1327_v11 = vld [vmem:[#allocation7] sm:$0xff]  }
  0x41   :  { %1229 = vmatprep.subr.bf16.mxu1 %v1336_v7  ;;  %v1338_v10 = vld [vmem:[#allocation10 + $0x28] sm:$0xff]   ;;  %v1339_v12 = vld [vmem:[#allocation10 + $0x20] sm:$0xff]   ;;  %v1340_v13 = vld [vmem:[#allocation10 + $0x18] sm:$0xff]  }
  0x42   :  { %1230 = vmatpush3.bf16.msra.mxu1 %v1336_v7  ;;  %v1329_v14 = vld [vmem:[#allocation4 + $0x8] sm:$0xff]   ;;  %v1330_v15 = vld [vmem:[#allocation4 + $0x10] sm:$0xff]   ;;  %v1331_v16 = vld [vmem:[#allocation4 + $0x18] sm:$0xff]  }
  0x43   :  { %1200 = vmatpush3.bf16.msra.mxu0 %v1321_v1  ;;  %1231 = vmatprep.subr.bf16.mxu1 %v1337_v8  ;;  %v1332_v17 = vld [vmem:[#allocation4 + $0x20] sm:$0xff]   ;;  %v1333_v18 = vld [vmem:[#allocation4 + $0x28] sm:$0xff]   ;;  %v1334_v19 = vld [vmem:[#allocation4 + $0x30] sm:$0xff]  }
  0x44   :  { %1201 = vmatprep.subr.bf16.mxu0 %v1322_v2  ;;  %v1335_v20 = vld [vmem:[#allocation4 + $0x38] sm:$0xff]   ;;  %v1341_v21 = vld [vmem:[#allocation10 + $0x10] sm:$0xff]   ;;  %v1342_v22 = vld [vmem:[#allocation10 + $0x8] sm:$0xff]  }
  0x45   :  { %v1343_v23 = vld [vmem:[#allocation10] sm:$0xff]   ;;  %v1344_v24 = vld [vmem:[#allocation12 + $0x38] sm:$0xff]   ;;  %v1593_v25 = vld [vmem:[#allocation12 + $0x30] sm:$0xff]  }
  0x46   :  { %1232 = vmatpush3.bf16.msra.mxu1 %v1337_v8  ;;  %v1596_v26 = vld [vmem:[#allocation12 + $0x28] sm:$0xff]   ;;  %v1600_v27 = vld [vmem:[#allocation12 + $0x20] sm:$0xff]   ;;  %v1604_v28 = vld [vmem:[#allocation12 + $0x18] sm:$0xff]  }
  0x47   :  { %1202 = vmatpush3.bf16.msra.mxu0 %v1322_v2  ;;  %1233 = vmatprep.subr.bf16.mxu1 %v1338_v10  ;;  %v1064_v29 = vld [vmem:[#allocation9] sm:$0xff]   ;;  %v1135_v30 = vld [vmem:[#allocation9 + $0x8] sm:$0xff]   ;;  %v1136_v43 = vld [vmem:[#allocation9 + $0x10] sm:$0xff]  }
  0x48   :  { %1203 = vmatprep.subr.bf16.mxu0 %v1323_v3  ;;  %v1070_v31 = vunpack.c.h.bf16 %v1135_v30  ;;  %v1065_v32 = vunpack.c.l.bf16 %v1064_v29  ;;  %v1066_v33 = vunpack.c.h.bf16 %v1064_v29  ;;  %v1069_v35 = vunpack.c.l.bf16 %v1135_v30  ;;  %v1137_v44 = vld [vmem:[#allocation9 + $0x18] sm:$0xff]   ;;  %v1138_v63 = vld [vmem:[#allocation9 + $0x20] sm:$0xff]   ;;  %v1139_v0 = vld [vmem:[#allocation9 + $0x28] sm:$0xff]  }
  0x49   :  { %v1078_v47 = vunpack.c.h.bf16 %v1137_v44  ;;  %v1073_v50 = vunpack.c.l.bf16 %v1136_v43  ;;  %v1074_v51 = vunpack.c.h.bf16 %v1136_v43  ;;  %v1077_v54 = vunpack.c.l.bf16 %v1137_v44 }
  0x4a   :  { %1234 = vmatpush3.bf16.msra.mxu1 %v1338_v10  ;;  %v437_v38 = vmul.f32 %v1070_v31, %v1612_v36  ;;  %v434_v39 = vmul.f32 %v1065_v32, %v1612_v36  ;;  %v435_v40 = vmul.f32 %v1066_v33, %v1612_v36  ;;  %v436_v41 = vmul.f32 %v1069_v35, %v1612_v36 }
  0x4b   :  { %1204 = vmatpush3.bf16.msra.mxu0 %v1323_v3  ;;  %1235 = vmatprep.subr.bf16.mxu1 %v1339_v12  ;;  %v441_v58 = vmul.f32 %v1078_v47, %v1612_v36  ;;  %v438_v59 = vmul.f32 %v1073_v50, %v1612_v36  ;;  %v439_v60 = vmul.f32 %v1074_v51, %v1612_v36  ;;  %v1086_v3 = vunpack.c.h.bf16 %v1139_v0  ;;  %v1013_v51 = vld [vmem:[%s1676_s5] ss:$0 sm:$0xff] }
  0x4c   :  { %1205 = vmatprep.subr.bf16.mxu0 %v1324_v5  ;;  %v440_v61 = vmul.f32 %v1077_v54, %v1612_v36  ;;  %v1082_v7 = vunpack.c.h.bf16 %v1138_v63  ;;  %v1085_v10 = vunpack.c.l.bf16 %v1139_v0 }
  0x4e   :  { %1236 = vmatpush3.bf16.msra.mxu1 %v1339_v12 }
  0x4f   :  { %1206 = vmatpush3.bf16.msra.mxu0 %v1324_v5  ;;  %1237 = vmatprep.subr.bf16.mxu1 %v1340_v13 }
  0x50   :  { %1207 = vmatprep.subr.bf16.mxu0 %v1325_v6 }
  0x52   :  { %1238 = vmatpush3.bf16.msra.mxu1 %v1340_v13 }
  0x53   :  { %1208 = vmatpush3.bf16.msra.mxu0 %v1325_v6  ;;  %1239 = vmatprep.subr.bf16.mxu1 %v1341_v21  ;;  %v1081_v6 = vunpack.c.l.bf16 %v1138_v63 }
  0x54   :  { %1209 = vmatprep.subr.bf16.mxu0 %v1326_v9 }
  0x56   :  { %1240 = vmatpush3.bf16.msra.mxu1 %v1341_v21 }
  0x57   :  { %1210 = vmatpush3.bf16.msra.mxu0 %v1326_v9  ;;  %1241 = vmatprep.subr.bf16.mxu1 %v1342_v22 }
  0x58   :  { %1211 = vmatprep.subr.bf16.mxu0 %v1327_v11 }
  0x5a   :  { %1242 = vmatpush3.bf16.msra.mxu1 %v1342_v22 }
  0x5b   :  { %1212 = vmatpush3.bf16.msra.mxu0 %v1327_v11  ;;  %1243 = vmatprep.subr.bf16.mxu1 %v1343_v23 }
  0x5c   :  { %1261 = vmatprep.subr.bf16.mxu0 %v1344_v24 }
  0x5e   :  { %1214 = vmatmul.mubr.bf16.vlgmr.msra.gmra.mxu0 %v1329_v14  ;;  %1244 = vmatpush3.bf16.msra.mxu1 %v1343_v23  ;;  %v445_v14 = vmul.f32 %v1086_v3, %v1612_v36 }
  0x5f   :  { %1217 = vmatprep.mubr.bf16.mxu0 %v1330_v15  ;;  %1293 = vmatprep.subr.bf16.mxu1 %v1344_v24  ;;  %v442_v15 = vmul.f32 %v1081_v6, %v1612_v36 }
  0x60   :  { %1262 = vmatpush3.bf16.msra.mxu0 %v1344_v24 }
  0x61   :  { %1263 = vmatprep.subr.bf16.mxu0 %v1593_v25 }
  0x64   :  { %1264 = vmatpush3.bf16.msra.mxu0 %v1593_v25 }
  0x65   :  { %1265 = vmatprep.subr.bf16.mxu0 %v1596_v26 }
  0x66   :  { %1218 = vmatmul.mubr.bf16.gmra.mxu0 %v1331_v16  ;;  %v443_v16 = vmul.f32 %v1082_v7, %v1612_v36 }
  0x67   :  { %1221 = vmatprep.mubr.bf16.mxu0 %v1332_v17  ;;  %v444_v17 = vmul.f32 %v1085_v10, %v1612_v36 }
  0x68   :  { %1266 = vmatpush3.bf16.msra.mxu0 %v1596_v26 }
  0x69   :  { %1267 = vmatprep.subr.bf16.mxu0 %v1600_v27 }
  0x6c   :  { %1268 = vmatpush3.bf16.msra.mxu0 %v1600_v27 }
  0x6d   :  { %1269 = vmatprep.subr.bf16.mxu0 %v1604_v28 }
  0x6e   :  { %1222 = vmatmul.mubr.bf16.gmra.mxu0 %v1333_v18 }
  0x6f   :  { %1225 = vmatprep.mubr.bf16.mxu0 %v1334_v19  ;;  %v1140_v19 = vld [vmem:[#allocation9 + $0x30] sm:$0xff]  }
  0x70   :  { %1270 = vmatpush3.bf16.msra.mxu0 %v1604_v28  ;;  %v1089_v29 = vunpack.c.l.bf16 %v1140_v19  ;;  %v1090_v30 = vunpack.c.h.bf16 %v1140_v19 }
  0x76   :  { %1226 = vmatmul.mubr.bf16.gmra.mxu0 %v1335_v20  ;;  %v1141_v20 = vld [vmem:[#allocation9 + $0x38] sm:$0xff]  }
  0x77   :  { %v1094_v23 = vunpack.c.h.bf16 %v1141_v20  ;;  %v1093_v33 = vunpack.c.l.bf16 %v1141_v20 }
 0x11e   :  { %v1215_v34 = vpop.f32.mrf.mxu0 }
 0x11f   :  { %v468_v52 = vadd.f32 %v1215_v34, %v436_v41 }
 0x120   :  { %v301_v37 = vpop.f32.mrf.mxu0 }
 0x121   :  { %v466_v48 = vadd.f32 %v434_v39, %v301_v37  ;;  %v447_v39 = vmul.f32 %v1090_v30, %v1612_v36 }
 0x122   :  { %v1216_v42 = vpop.f32.mrf.mxu0 }
 0x123   :  { %v469_v45 = vadd.f32 %v1216_v42, %v437_v38  ;;  %v449_v38 = vmul.f32 %v1094_v23, %v1612_v36 }
 0x124   :  { %v304_v46 = vpop.f32.mrf.mxu0 }
 0x125   :  { %v467_v49 = vadd.f32 %v435_v40, %v304_v46  ;;  %v483_v56 = vpack.c.bf16 %v469_v45, %v468_v52  ;;  %v448_v40 = vmul.f32 %v1093_v33, %v1612_v36 }
 0x126   :  { %v1219_v53 = vpop.f32.mrf.mxu0 }
 0x127   :  { %v482_v55 = vpack.c.bf16 %v467_v49, %v466_v48  ;;  %v472_v8 = vadd.f32 %v1219_v53, %v440_v61  ;;  %v1349_v48 = vld [vmem:[#allocation12 + $0x10] sm:$0xff]   ;;  %v1350_v49 = vld [vmem:[#allocation12 + $0x8] sm:$0xff]  }
 0x128   :  { %v317_v57 = vpop.f32.mrf.mxu0  ;;  %1271 = vmatprep.subr.bf16.mxu0 %v1349_v48 }
 0x129   :  { %1245 = vmatprep.mubr.bf16.mxu1 %v482_v55  ;;  %v470_v4 = vadd.f32 %v438_v59, %v317_v57  ;;  %1272 = vmatpush3.bf16.msra.mxu0 %v1349_v48 }
 0x12a   :  { %v1220_v62 = vpop.f32.mrf.mxu0  ;;  %1246 = vmatmul.mubr.bf16.vlgmr.msra.gmra.mxu1 %v483_v56  ;;  %1273 = vmatprep.subr.bf16.mxu0 %v1350_v49 }
 0x12b   :  { %1301 = vmatpush3.bf16.msra.mxu1 %v1344_v24  ;;  %v473_v1 = vadd.f32 %v1220_v62, %v441_v58 }
 0x12c   :  { %v320_v2 = vpop.f32.mrf.mxu0  ;;  %1294 = vmatprep.subr.bf16.mxu1 %v1593_v25 }
 0x12d   :  { %v471_v5 = vadd.f32 %v439_v60, %v320_v2  ;;  %v485_v12 = vpack.c.bf16 %v473_v1, %v472_v8  ;;  %1274 = vmatpush3.bf16.msra.mxu0 %v1350_v49 }
 0x12e   :  { %v1223_v9 = vpop.f32.mrf.mxu0 }
 0x12f   :  { %v484_v11 = vpack.c.bf16 %v471_v5, %v470_v4  ;;  %1302 = vmatpush3.bf16.msra.mxu1 %v1593_v25  ;;  %v476_v31 = vadd.f32 %v1223_v9, %v444_v17 }
 0x130   :  { %v333_v13 = vpop.f32.mrf.mxu0  ;;  %1295 = vmatprep.subr.bf16.mxu1 %v1596_v26 }
 0x131   :  { %1249 = vmatprep.mubr.bf16.mxu1 %v484_v11  ;;  %v474_v24 = vadd.f32 %v442_v15, %v333_v13 }
 0x132   :  { %v1224_v18 = vpop.f32.mrf.mxu0  ;;  %1250 = vmatmul.mubr.bf16.gmra.mxu1 %v485_v12 }
 0x133   :  { %1303 = vmatpush3.bf16.msra.mxu1 %v1596_v26  ;;  %v477_v21 = vadd.f32 %v1224_v18, %v445_v14  ;;  %v446_v26 = vmul.f32 %v1089_v29, %v1612_v36 }
 0x134   :  { %v336_v22 = vpop.f32.mrf.mxu0  ;;  %1296 = vmatprep.subr.bf16.mxu1 %v1600_v27 }
 0x135   :  { %v475_v25 = vadd.f32 %v443_v16, %v336_v22  ;;  %v487_v35 = vpack.c.bf16 %v477_v21, %v476_v31 }
 0x136   :  { %v1227_v32 = vpop.f32.mrf.mxu0 }
 0x137   :  { %v486_v34 = vpack.c.bf16 %v475_v25, %v474_v24  ;;  %1304 = vmatpush3.bf16.msra.mxu1 %v1600_v27  ;;  %v480_v45 = vadd.f32 %v1227_v32, %v448_v40 }
 0x138   :  { %v349_v37 = vpop.f32.mrf.mxu0  ;;  %1297 = vmatprep.subr.bf16.mxu1 %v1604_v28 }
 0x139   :  { %1253 = vmatprep.mubr.bf16.mxu1 %v486_v34  ;;  %v478_v27 = vadd.f32 %v446_v26, %v349_v37 }
 0x13a   :  { %v1228_v41 = vpop.f32.mrf.mxu0  ;;  %1254 = vmatmul.mubr.bf16.gmra.mxu1 %v487_v35 }
 0x13b   :  { %1305 = vmatpush3.bf16.msra.mxu1 %v1604_v28  ;;  %v481_v42 = vadd.f32 %v1228_v41, %v449_v38  ;;  %v1351_v28 = vld [vmem:[#allocation12] sm:$0xff]  }
 0x13c   :  { %v352_v43 = vpop.f32.mrf.mxu0  ;;  %1298 = vmatprep.subr.bf16.mxu1 %v1349_v48  ;;  %1275 = vmatprep.subr.bf16.mxu0 %v1351_v28 }
 0x13d   :  { %v479_v44 = vadd.f32 %v447_v39, %v352_v43  ;;  %v489_v47 = vpack.c.bf16 %v481_v42, %v480_v45  ;;  %1276 = vmatpush3.bf16.msra.mxu0 %v1351_v28 }
 0x13f   :  { %v488_v46 = vpack.c.bf16 %v479_v44, %v478_v27  ;;  %1306 = vmatpush3.bf16.msra.mxu1 %v1349_v48  ;;  %v1644_v44 = vld [vmem:[%s1678_s7] ss:$0 sm:$0xff]  ;;  %s1509_s7 = smov [#allocation13]  }
 0x140   :  { %1299 = vmatprep.subr.bf16.mxu1 %v1350_v49  ;;  %s967_s17 = sshll.u32 %s1509_s7, 4  ;;  %s968_s17 = int_to_ptr.vmem [resolvable:$true] %s967_s17 }
 0x141   :  { %1257 = vmatprep.mubr.bf16.mxu1 %v488_v46  ;;  %s1452_s20 = scalar_lea.vmem %s968_s17, 2048  ;;  %p1457_p12 = scmp.lt.s32.totalorder %s968_s17, %s968_s17 }
 0x142   :  { %1258 = vmatmul.mubr.bf16.gmra.mxu1 %v489_v47  ;;  %p1453_p11 = scmp.ne.s32.totalorder %s968_s17, %s1452_s20  ;;  %p1458_p13 = scmp.lt.s32.totalorder %s1452_s20, %s1452_s20 }
 0x143   :  { %1307 = vmatpush3.bf16.msra.mxu1 %v1350_v49 }
 0x144   :  { %1300 = vmatprep.subr.bf16.mxu1 %v1351_v28  ;;  %p1459_p0 = por %p1458_p13, %p1457_p12 }
 0x146   :  { %p1460_p1 = pnand %p1459_p0, %p1453_p11 }
 0x147   :  { %1308 = vmatpush3.bf16.msra.mxu1 %v1351_v28 }
 0x1ea   :  { %v1247_v36 = vpop.f32.mrf.mxu1 }
 0x1eb   :  { %v604_v55 = vadd.f32 %v1247_v36, %v1013_v51 }
 0x1ec   :  { %v595_v50 = vpop.f32.mrf.mxu1 }
 0x1ed   :  { %v596_v53 = vadd.f32 %v1013_v51, %v595_v50  ;;  %v660_v62 = vmax.f32 %v604_v55, 0.0 }
 0x1ee   :  { %v1248_v52 = vpop.f32.mrf.mxu1 }
 0x1ef   :  { %v607_v54 = vadd.f32 %v1248_v52, %v1013_v51  ;;  %v658_v60 = vmax.f32 %v596_v53, 0.0 }
 0x1f0   :  { %v598_v56 = vpop.f32.mrf.mxu1 }
 0x1f1   :  { %v599_v57 = vadd.f32 %v1013_v51, %v598_v56  ;;  %v661_v58 = vmax.f32 %v607_v54, 0.0 }
 0x1f2   :  { %v1251_v59 = vpop.f32.mrf.mxu1 }
 0x1f3   :  { %v659_v61 = vmax.f32 %v599_v57, 0.0  ;;  %v675_v1 = vpack.c.bf16 %v661_v58, %v660_v62  ;;  %v620_v5 = vadd.f32 %v1251_v59, %v1013_v51 }
 0x1f4   :  { %v611_v63 = vpop.f32.mrf.mxu1 }
 0x1f5   :  { %v674_v0 = vpack.c.bf16 %v659_v61, %v658_v60  ;;  %v612_v3 = vadd.f32 %v1013_v51, %v611_v63  ;;  %v664_v12 = vmax.f32 %v620_v5, 0.0 }
 0x1f6   :  { %v1252_v2 = vpop.f32.mrf.mxu1 }
 0x1f7   :  { %v623_v4 = vadd.f32 %v1252_v2, %v1013_v51  ;;  %1277 = vmatprep.mubr.bf16.mxu0 %v674_v0  ;;  %v662_v10 = vmax.f32 %v612_v3, 0.0 }
 0x1f8   :  { %v614_v6 = vpop.f32.mrf.mxu1  ;;  %1278 = vmatmul.mubr.bf16.vlgmr.msra.gmra.mxu0 %v675_v1 }
 0x1f9   :  { %v615_v7 = vadd.f32 %v1013_v51, %v614_v6  ;;  %v665_v8 = vmax.f32 %v623_v4, 0.0 }
 0x1fa   :  { %v1255_v9 = vpop.f32.mrf.mxu1 }
 0x1fb   :  { %v663_v11 = vmax.f32 %v615_v7, 0.0  ;;  %v677_v15 = vpack.c.bf16 %v665_v8, %v664_v12  ;;  %v636_v19 = vadd.f32 %v1255_v9, %v1013_v51 }
 0x1fc   :  { %v627_v13 = vpop.f32.mrf.mxu1 }
 0x1fd   :  { %v676_v14 = vpack.c.bf16 %v663_v11, %v662_v10  ;;  %v628_v17 = vadd.f32 %v1013_v51, %v627_v13  ;;  %v668_v29 = vmax.f32 %v636_v19, 0.0 }
 0x1fe   :  { %v1256_v16 = vpop.f32.mrf.mxu1 }
 0x1ff   :  { %v639_v18 = vadd.f32 %v1256_v16, %v1013_v51  ;;  %1281 = vmatprep.mubr.bf16.mxu0 %v676_v14  ;;  %v666_v24 = vmax.f32 %v628_v17, 0.0 }
 0x200   :  { %v630_v20 = vpop.f32.mrf.mxu1  ;;  %1282 = vmatmul.mubr.bf16.gmra.mxu0 %v677_v15 }
 0x201   :  { %v631_v21 = vadd.f32 %v1013_v51, %v630_v20  ;;  %v669_v22 = vmax.f32 %v639_v18, 0.0 }
 0x202   :  { %v1259_v23 = vpop.f32.mrf.mxu1 }
 0x203   :  { %v667_v25 = vmax.f32 %v631_v21, 0.0  ;;  %v679_v32 = vpack.c.bf16 %v669_v22, %v668_v29  ;;  %v652_v37 = vadd.f32 %v1259_v23, %v1013_v51 }
 0x204   :  { %v643_v30 = vpop.f32.mrf.mxu1 }
 0x205   :  { %v678_v31 = vpack.c.bf16 %v667_v25, %v666_v24  ;;  %v644_v34 = vadd.f32 %v1013_v51, %v643_v30  ;;  %v672_v42 = vmax.f32 %v652_v37, 0.0 }
 0x206   :  { %v1260_v33 = vpop.f32.mrf.mxu1 }
 0x207   :  { %v655_v35 = vadd.f32 %v1260_v33, %v1013_v51  ;;  %1285 = vmatprep.mubr.bf16.mxu1 %v678_v31  ;;  %v670_v40 = vmax.f32 %v644_v34, 0.0 }
 0x208   :  { %v646_v38 = vpop.f32.mrf.mxu1  ;;  %1286 = vmatmul.mubr.bf16.vlgmr.msra.gmra.mxu1 %v679_v32 }
 0x209   :  { %v647_v26 = vadd.f32 %v1013_v51, %v646_v38  ;;  %v673_v39 = vmax.f32 %v655_v35, 0.0 }
 0x20b   :  { %v671_v41 = vmax.f32 %v647_v26, 0.0  ;;  %v681_v27 = vpack.c.bf16 %v673_v39, %v672_v42 }
 0x20d   :  { %v680_v43 = vpack.c.bf16 %v671_v41, %v670_v40 }
 0x20f   :  { %1289 = vmatprep.mubr.bf16.mxu1 %v680_v43 }
 0x210   :  { %1290 = vmatmul.mubr.bf16.gmra.mxu1 %v681_v27 }
 0x2b8   :  { %v1279_v45 = vpop.f32.mrf.mxu0 }
 0x2b9   :  { %v796_v46 = vadd.f32 %v1279_v45, %v1644_v44 }
 0x2ba   :  { %v787_v47 = vpop.f32.mrf.mxu0 }
 0x2bb   :  { %v852_v48 = vmax.f32 %v796_v46, 0.0  ;;  %v788_v49 = vadd.f32 %v1644_v44, %v787_v47 }
 0x2bc   :  { %v1280_v28 = vpop.f32.mrf.mxu0 }
 0x2bd   :  { %868 = vst [vmem:[#allocation13 + $0x10] sm:$0xff] %v852_v48  ;;  %v850_v36 = vmax.f32 %v788_v49, 0.0  ;;  %v799_v50 = vadd.f32 %v1280_v28, %v1644_v44 }
 0x2be   :  { %v790_v51 = vpop.f32.mrf.mxu0 }
 0x2bf   :  { %866 = vst [vmem:[#allocation13] sm:$0xff] %v850_v36  ;;  %v853_v52 = vmax.f32 %v799_v50, 0.0  ;;  %v791_v53 = vadd.f32 %v1644_v44, %v790_v51 }
 0x2c0   :  { %v1283_v54 = vpop.f32.mrf.mxu0 }
 0x2c1   :  { %869 = vst [vmem:[#allocation13 + $0x18] sm:$0xff] %v853_v52  ;;  %v1103_v55 = vpack.c.bf16 %v853_v52, %v852_v48  ;;  %v851_v56 = vmax.f32 %v791_v53, 0.0  ;;  %v812_v57 = vadd.f32 %v1283_v54, %v1644_v44 }
 0x2c2   :  { %v803_v58 = vpop.f32.mrf.mxu0 }
 0x2c3   :  { %1142 = vst [vmem:[#allocation14 + $0x8] sm:$0xff] %v1103_v55   ;;  %867 = vst [vmem:[#allocation13 + $0x8] sm:$0xff] %v851_v56  ;;  %v1098_v59 = vpack.c.bf16 %v851_v56, %v850_v36  ;;  %v856_v60 = vmax.f32 %v812_v57, 0.0  ;;  %v804_v61 = vadd.f32 %v1644_v44, %v803_v58 }
 0x2c4   :  { %v1284_v62 = vpop.f32.mrf.mxu0 }
 0x2c5   :  { %1099 = vst [vmem:[#allocation14] sm:$0xff] %v1098_v59   ;;  %872 = vst [vmem:[#allocation13 + $0x30] sm:$0xff] %v856_v60  ;;  %v854_v63 = vmax.f32 %v804_v61, 0.0  ;;  %v815_v0 = vadd.f32 %v1284_v62, %v1644_v44 }
 0x2c6   :  { %v806_v1 = vpop.f32.mrf.mxu0 }
 0x2c7   :  { %870 = vst [vmem:[#allocation13 + $0x20] sm:$0xff] %v854_v63  ;;  %v857_v2 = vmax.f32 %v815_v0, 0.0  ;;  %v807_v3 = vadd.f32 %v1644_v44, %v806_v1 }
 0x2c8   :  { %v1287_v4 = vpop.f32.mrf.mxu1 }
 0x2c9   :  { %873 = vst [vmem:[#allocation13 + $0x38] sm:$0xff] %v857_v2  ;;  %v1113_v5 = vpack.c.bf16 %v857_v2, %v856_v60  ;;  %v855_v6 = vmax.f32 %v807_v3, 0.0  ;;  %v828_v7 = vadd.f32 %v1287_v4, %v1644_v44 }
 0x2ca   :  { %v819_v8 = vpop.f32.mrf.mxu1 }
 0x2cb   :  { %1144 = vst [vmem:[#allocation14 + $0x18] sm:$0xff] %v1113_v5   ;;  %871 = vst [vmem:[#allocation13 + $0x28] sm:$0xff] %v855_v6  ;;  %v1108_v9 = vpack.c.bf16 %v855_v6, %v854_v63  ;;  %v860_v10 = vmax.f32 %v828_v7, 0.0  ;;  %v820_v11 = vadd.f32 %v1644_v44, %v819_v8 }
 0x2cc   :  { %v1288_v12 = vpop.f32.mrf.mxu1 }
 0x2cd   :  { %1143 = vst [vmem:[#allocation14 + $0x10] sm:$0xff] %v1108_v9   ;;  %876 = vst [vmem:[#allocation13 + $0x50] sm:$0xff] %v860_v10  ;;  %v858_v13 = vmax.f32 %v820_v11, 0.0  ;;  %v831_v14 = vadd.f32 %v1288_v12, %v1644_v44 }
 0x2ce   :  { %v822_v15 = vpop.f32.mrf.mxu1 }
 0x2cf   :  { %874 = vst [vmem:[#allocation13 + $0x40] sm:$0xff] %v858_v13  ;;  %v861_v16 = vmax.f32 %v831_v14, 0.0  ;;  %v823_v17 = vadd.f32 %v1644_v44, %v822_v15 }
 0x2d0   :  { %v1291_v18 = vpop.f32.mrf.mxu1 }
 0x2d1   :  { %877 = vst [vmem:[#allocation13 + $0x58] sm:$0xff] %v861_v16  ;;  %v1123_v19 = vpack.c.bf16 %v861_v16, %v860_v10  ;;  %v859_v20 = vmax.f32 %v823_v17, 0.0  ;;  %v844_v21 = vadd.f32 %v1291_v18, %v1644_v44 }
 0x2d2   :  { %v835_v22 = vpop.f32.mrf.mxu1 }
 0x2d3   :  { %1146 = vst [vmem:[#allocation14 + $0x28] sm:$0xff] %v1123_v19   ;;  %875 = vst [vmem:[#allocation13 + $0x48] sm:$0xff] %v859_v20  ;;  %v1118_v23 = vpack.c.bf16 %v859_v20, %v858_v13  ;;  %v864_v24 = vmax.f32 %v844_v21, 0.0  ;;  %v836_v25 = vadd.f32 %v1644_v44, %v835_v22 }
 0x2d4   :  { %v1292_v29 = vpop.f32.mrf.mxu1 }
 0x2d5   :  { %1145 = vst [vmem:[#allocation14 + $0x20] sm:$0xff] %v1118_v23   ;;  %880 = vst [vmem:[#allocation13 + $0x70] sm:$0xff] %v864_v24  ;;  %v862_v30 = vmax.f32 %v836_v25, 0.0  ;;  %v847_v31 = vadd.f32 %v1292_v29, %v1644_v44 }
 0x2d6   :  { %v838_v32 = vpop.f32.mrf.mxu1 }
 0x2d7   :  { %878 = vst [vmem:[#allocation13 + $0x60] sm:$0xff] %v862_v30  ;;  %v865_v33 = vmax.f32 %v847_v31, 0.0  ;;  %v839_v34 = vadd.f32 %v1644_v44, %v838_v32 }
 0x2d9   :  { %881 = vst [vmem:[#allocation13 + $0x78] sm:$0xff] %v865_v33  ;;  %v1133_v35 = vpack.c.bf16 %v865_v33, %v864_v24  ;;  %v863_v37 = vmax.f32 %v839_v34, 0.0 }
 0x2db   :  { %1148 = vst [vmem:[#allocation14 + $0x38] sm:$0xff] %v1133_v35   ;;  %879 = vst [vmem:[#allocation13 + $0x68] sm:$0xff] %v863_v37  ;;  %v1128_v38 = vpack.c.bf16 %v863_v37, %v862_v30 }
 0x2dc   :  { %1463 = shalt.err (!%p1460_p1)
}
 0x2dd   :  { %s1511_s21 = smov 128   ;;  %s1512_s22 = smov 8   ;;  %1147 = vst [vmem:[#allocation14 + $0x30] sm:$0xff] %v1128_v38  }
 0x2de   :  { %973 = dma.vmem_to_hbm [thread:$0]  %s968_s17, 2048, %s1679_s8, [#allocation6], %s1511_s21, %s1511_s21, %s1512_s22  }
 0x2df   :  { %s1472_s2 = scalar_lea.vmem %s980_s19, 1024  ;;  %p1477_p3 = scmp.lt.s32.totalorder %s980_s19, %s980_s19 }
 0x2e0   :  { %p1473_p2 = scmp.ne.s32.totalorder %s980_s19, %s1472_s2  ;;  %p1478_p4 = scmp.lt.s32.totalorder %s1472_s2, %s1472_s2 }
 0x2e2   :  { %p1479_p5 = por %p1478_p4, %p1477_p3 }
 0x2e4   :  { %p1480_p6 = pnand %p1479_p5, %p1473_p2 }
 0x2e6   :  { %1483 = shalt.err (!%p1480_p6)
}
 0x2e7   :  { %985 = dma.vmem_to_hbm [thread:$0]  %s980_s19, 1024, %s1680_s9, [#allocation15], %s1504_s14, %s1504_s14, %s1505_s15  }
 0x2e8   :  { %1498 = dma.done.wait [#allocation6], 2048  }
 0x2e9   :  { %1499 = vsyncadd [#allocation6], 4294965248 }
 0x2ea   :  { %1500 = dma.done.wait [#allocation15], 1024  }
 0x2eb   :  { %1501 = vsyncadd [#allocation15], 4294966272 }
 0x2ec   :  { %992 = vsyncpa [#allocation5], 1 }
 0x2ed   :  { %993 = vsyncpa [#allocation8], 1 }
 0x2ee   :  { %994 = vsyncpa [#allocation11], 1 }
 0x2ef   :  { %995 = vsyncpa [#allocation6], 1 }
 0x2f0   :  { %996 = vsyncpa [#allocation15], 1 }

</bundles_post_ra>
